<compile_context>
chip_gen: v6e
topology: v6e:2x2x1
jax: 0.10.0
libtpu: 0.0.40
codegen_flags: <defaults>
</compile_context>

<pallas_src>
import jax
import jax.numpy as jnp
from jax.experimental import pallas as pl
from jax.experimental.pallas import tpu as pltpu


def _pang_kernel(p_ref, x_ref, w0_ref, b0_ref, w1_ref, b1_ref, o_ref):
    # p_ref : (1, TM, 9*Cin)   bf16  low-res im2col taps (3x3, stride-2, dilated)
    # x_ref : (1, 4, TM, Cin)  bf16  4 phase-decimated sub-images, k = dh*2 + dw
    # w0_ref: (9*Cin, Cout) bf16 ; b0_ref: (1, Cout) f32
    # w1_ref: (Cin,  Cout) bf16 ; b1_ref: (1, Cout) f32
    # o_ref : (1, TM, 4*Cout)  f32   phases packed along lanes (dh, dw, cout)

    # branch0 at LOW resolution (shared by all four upsample phases).
    y0 = jnp.dot(p_ref[0], w0_ref[...], preferred_element_type=jnp.float32)
    y0 = jnp.maximum(y0 + b0_ref[...], 0.0)                      # (TM, Cout)

    # branch1 per phase (the high-res pixels), added to the replicated y0.
    outs = []
    for k in range(4):
        y1 = jnp.dot(x_ref[0, k], w1_ref[...], preferred_element_type=jnp.float32)
        y1 = jnp.maximum(y1 + b1_ref[...], 0.0)                  # (TM, Cout)
        outs.append(y0 + y1)

    o_ref[0] = jnp.concatenate(outs, axis=-1).astype(o_ref.dtype)


def _pick_tile(rows_lo, cin, cout, budget_bytes=4 << 20):
    """Low-res row-tile size: multiple of 8 dividing rows_lo, bounded by a VMEM budget."""
    if rows_lo % 8 != 0:
        return rows_lo  # full-extent block is always legal
    # bytes per low-res row across pipelined blocks (bf16 inputs, f32 output)
    row_bytes = 9 * cin * 2 + 4 * cin * 2 + 4 * cout * 4
    tm = min(rows_lo, 2048, max(8, budget_bytes // max(1, row_bytes)))
    tm -= tm % 8
    tm = max(tm, 8)
    while rows_lo % tm:
        tm -= 8
    return tm


def pang_unit_stride(x_nchw, w0, b0, w1, b1, dilation=1):
    """w0: (Cout, Cin, 3, 3), b0: (Cout,), w1: (Cout, Cin, 1, 1), b1: (Cout,)."""
    N, Cin, H, W = x_nchw.shape
    Cout = w0.shape[0]
    d = int(dilation)
    assert H % 2 == 0 and W % 2 == 0, "even spatial dims so x2-upsampled branch0 matches branch1"
    Ho, Wo = H // 2, W // 2
    R = Ho * Wo  # low-res pixel count

    xf = x_nchw.astype(jnp.float32)

    # --- branch1 input: 4-phase decimation, folded into the NCHW->row-major transpose.
    # x_sub[n, dh*2+dw, oh*Wo+ow, ci] = x[n, ci, 2*oh+dh, 2*ow+dw]
    x_sub = xf.reshape(N, Cin, Ho, 2, Wo, 2)
    x_sub = jnp.transpose(x_sub, (0, 3, 5, 2, 4, 1)).reshape(N, 4, R, Cin)
    x_sub = x_sub.astype(jnp.bfloat16)

    # --- branch0 input: im2col at LOW resolution only (no upsample replication).
    x_nhwc = jnp.transpose(xf, (0, 2, 3, 1))                       # (N, H, W, Cin)
    xpad = jnp.pad(x_nhwc, ((0, 0), (d, d), (d, d), (0, 0)))
    taps = []
    for kh in range(3):
        for kw in range(3):
            taps.append(xpad[:, kh * d: kh * d + 2 * Ho: 2,
                                kw * d: kw * d + 2 * Wo: 2, :])    # (N, Ho, Wo, Cin)
    patches = jnp.concatenate(taps, axis=-1).reshape(N, R, 9 * Cin).astype(jnp.bfloat16)

    # Weight matrices ordered to match the tap-concat order (kh, kw, ci).
    w0_mat = jnp.transpose(w0, (2, 3, 1, 0)).reshape(9 * Cin, Cout).astype(jnp.bfloat16)
    w1_mat = jnp.transpose(w1[:, :, 0, 0], (1, 0)).astype(jnp.bfloat16)
    b0_row = b0.reshape(1, Cout).astype(jnp.float32)
    b1_row = b1.reshape(1, Cout).astype(jnp.float32)

    # --- spatial tiling over low-res rows + explicit VMEM budget.
    TM = _pick_tile(R, Cin, Cout)
    grid = (N, R // TM)
    block_bytes = TM * (9 * Cin * 2 + 4 * Cin * 2 + 4 * Cout * 4) \
        + (9 * Cin + Cin) * Cout * 2 + 2 * Cout * 4
    vmem_limit = int(min(64 * 1024 * 1024, max(32 * 1024 * 1024, 6 * block_bytes)))

    out_packed = pl.pallas_call(
        _pang_kernel,
        out_shape=jax.ShapeDtypeStruct((N, R, 4 * Cout), jnp.float32),
        grid=grid,
        in_specs=[
            pl.BlockSpec((1, TM, 9 * Cin), lambda n, m: (n, m, 0)),
            pl.BlockSpec((1, 4, TM, Cin), lambda n, m: (n, 0, m, 0)),
            pl.BlockSpec((9 * Cin, Cout), lambda n, m: (0, 0)),
            pl.BlockSpec((1, Cout), lambda n, m: (0, 0)),
            pl.BlockSpec((Cin, Cout), lambda n, m: (0, 0)),
            pl.BlockSpec((1, Cout), lambda n, m: (0, 0)),
        ],
        out_specs=pl.BlockSpec((1, TM, 4 * Cout), lambda n, m: (n, m, 0)),
        compiler_params=pltpu.CompilerParams(
            dimension_semantics=("parallel", "parallel"),
            vmem_limit_bytes=vmem_limit,
        ),
    )(patches, x_sub, w0_mat, b0_row, w1_mat, b1_row)

    # Un-interleave the phase packing, fused with the NCHW output transpose.
    out = out_packed.reshape(N, Ho, Wo, 2, 2, Cout)                # (n, oh, ow, dh, dw, c)
    out = jnp.transpose(out, (0, 5, 1, 3, 2, 4)).reshape(N, Cout, H, W)
    return out


def _reference(x_nchw, w0, b0, w1, b1, dilation):
    """Pure-JAX reference of the PyTorch forward (for verification)."""
    d = int(dilation)
    y0 = jax.lax.conv_general_dilated(
        x_nchw, w0, window_strides=(2, 2), padding=[(d, d), (d, d)],
        rhs_dilation=(d, d), dimension_numbers=("NCHW", "OIHW", "NCHW"))
    y0 = jax.nn.relu(y0 + b0[None, :, None, None])
    y0 = jnp.repeat(jnp.repeat(y0, 2, axis=2), 2, axis=3)          # nearest upsample x2
    y1 = jax.lax.conv_general_dilated(
        x_nchw, w1, window_strides=(1, 1), padding="VALID",
        dimension_numbers=("NCHW", "OIHW", "NCHW"))
    y1 = jax.nn.relu(y1 + b1[None, :, None, None])
    return y1 + y0


if __name__ == "__main__":
    key = jax.random.PRNGKey(0)
    N, Cin, Cout, H, W = 2, 4, 8, 16, 16

    k_x, k_w0, k_b0, k_w1, k_b1 = jax.random.split(key, 5)
    x = jax.random.normal(k_x, (N, Cin, H, W), dtype=jnp.float32)
    # Deterministic synthetic parameters (shapes per the module's __init__).
    w0 = 0.1 * jax.random.normal(k_w0, (Cout, Cin, 3, 3), dtype=jnp.float32)
    b0 = 0.1 * jax.random.normal(k_b0, (Cout,), dtype=jnp.float32)
    w1 = 0.1 * jax.random.normal(k_w1, (Cout, Cin, 1, 1), dtype=jnp.float32)
    b1 = 0.1 * jax.random.normal(k_b1, (Cout,), dtype=jnp.float32)

    ok = True
    for dilation in (1, 2):
        out = pang_unit_stride(x, w0, b0, w1, b1, dilation=dilation)
        out = jax.block_until_ready(out)
        ref = jax.block_until_ready(_reference(x, w0, b0, w1, b1, dilation))
        if out.shape != (N, Cout, H, W):
            ok = False
        # bf16 matmul operands with f32 accumulation -> loosened tolerance.
        if not bool(jnp.allclose(out, ref, rtol=3e-2, atol=3e-2)):
            ok = False

    if ok:
        print("KERNEL_OK")
    else:
        print("KERNEL_MISMATCH")
</pallas_src>

<mosaic_0001>
module attributes {stable_mosaic.version = 11 : i64} {
  func.func @_pang_kernel(%arg0: i32, %arg1: i32, %arg2: memref<1x64x36xbf16, #tpu.memory_space<vmem>>, %arg3: memref<1x4x64x4xbf16, #tpu.memory_space<vmem>>, %arg4: memref<36x8xbf16, #tpu.memory_space<vmem>>, %arg5: memref<1x8xf32, #tpu.memory_space<vmem>>, %arg6: memref<4x8xbf16, #tpu.memory_space<vmem>>, %arg7: memref<1x8xf32, #tpu.memory_space<vmem>>, %arg8: memref<1x64x32xf32, #tpu.memory_space<vmem>>) attributes {dimension_semantics = [#tpu.dimension_semantics<parallel>, #tpu.dimension_semantics<parallel>], iteration_bounds = array<i64: 2, 1>, scalar_prefetch = 0 : i64, scratch_operands = 0 : i64, tpu.core_type = #tpu.core_type<tc>, window_params = [{transform_indices = @transform_0, window_bounds = array<i64: 1, 64, 36>}, {transform_indices = @transform_1, window_bounds = array<i64: 1, 4, 64, 4>}, {pipeline_mode = #tpu.pipeline_mode<synchronous>, transform_indices = @transform_2, window_bounds = array<i64: 36, 8>}, {pipeline_mode = #tpu.pipeline_mode<synchronous>, transform_indices = @transform_3, window_bounds = array<i64: 1, 8>}, {pipeline_mode = #tpu.pipeline_mode<synchronous>, transform_indices = @transform_4, window_bounds = array<i64: 4, 8>}, {pipeline_mode = #tpu.pipeline_mode<synchronous>, transform_indices = @transform_5, window_bounds = array<i64: 1, 8>}, {transform_indices = @transform_6, window_bounds = array<i64: 1, 64, 32>}]} {
    %c0 = arith.constant 0 : index
    %c0_0 = arith.constant 0 : index
    %c0_1 = arith.constant 0 : index
    %0 = vector.load %arg2[%c0, %c0_0, %c0_1] : memref<1x64x36xbf16, #tpu.memory_space<vmem>>, vector<1x64x36xbf16>
    %1 = vector.shape_cast %0 : vector<1x64x36xbf16> to vector<64x36xbf16>
    %c0_2 = arith.constant 0 : index
    %c0_3 = arith.constant 0 : index
    %2 = vector.load %arg4[%c0_2, %c0_3] : memref<36x8xbf16, #tpu.memory_space<vmem>>, vector<36x8xbf16>
    %cst = arith.constant dense<0.000000e+00> : vector<64x8xf32>
    %3 = tpu.matmul %1, %2, %cst {dimension_numbers = #tpu.dot_dimension_numbers<[1], [0], [0], [1], [0, 0, 1, 1], [], []>} : vector<64x36xbf16>, vector<36x8xbf16>, vector<64x8xf32> -> vector<64x8xf32>
    %c0_4 = arith.constant 0 : index
    %c0_5 = arith.constant 0 : index
    %4 = vector.load %arg5[%c0_4, %c0_5] : memref<1x8xf32, #tpu.memory_space<vmem>>, vector<1x8xf32>
    %5 = vector.broadcast %4 : vector<1x8xf32> to vector<64x8xf32>
    %6 = arith.addf %3, %5 : vector<64x8xf32>
    %cst_6 = arith.constant 0.000000e+00 : f32
    %7 = vector.broadcast %cst_6 : f32 to vector<64x8xf32>
    %8 = arith.maximumf %6, %7 : vector<64x8xf32>
    %c0_7 = arith.constant 0 : index
    %c0_8 = arith.constant 0 : index
    %c0_9 = arith.constant 0 : index
    %c0_10 = arith.constant 0 : index
    %9 = vector.load %arg3[%c0_7, %c0_8, %c0_9, %c0_10] : memref<1x4x64x4xbf16, #tpu.memory_space<vmem>>, vector<1x1x64x4xbf16>
    %10 = vector.shape_cast %9 : vector<1x1x64x4xbf16> to vector<64x4xbf16>
    %c0_11 = arith.constant 0 : index
    %c0_12 = arith.constant 0 : index
    %11 = vector.load %arg6[%c0_11, %c0_12] : memref<4x8xbf16, #tpu.memory_space<vmem>>, vector<4x8xbf16>
    %cst_13 = arith.constant dense<0.000000e+00> : vector<64x8xf32>
    %12 = tpu.matmul %10, %11, %cst_13 {dimension_numbers = #tpu.dot_dimension_numbers<[1], [0], [0], [1], [0, 0, 1, 1], [], []>} : vector<64x4xbf16>, vector<4x8xbf16>, vector<64x8xf32> -> vector<64x8xf32>
    %c0_14 = arith.constant 0 : index
    %c0_15 = arith.constant 0 : index
    %13 = vector.load %arg7[%c0_14, %c0_15] : memref<1x8xf32, #tpu.memory_space<vmem>>, vector<1x8xf32>
    %14 = vector.broadcast %13 : vector<1x8xf32> to vector<64x8xf32>
    %15 = arith.addf %12, %14 : vector<64x8xf32>
    %cst_16 = arith.constant 0.000000e+00 : f32
    %16 = vector.broadcast %cst_16 : f32 to vector<64x8xf32>
    %17 = arith.maximumf %15, %16 : vector<64x8xf32>
    %18 = arith.addf %8, %17 : vector<64x8xf32>
    %c0_17 = arith.constant 0 : index
    %c1 = arith.constant 1 : index
    %c0_18 = arith.constant 0 : index
    %c0_19 = arith.constant 0 : index
    %19 = vector.load %arg3[%c0_17, %c1, %c0_18, %c0_19] : memref<1x4x64x4xbf16, #tpu.memory_space<vmem>>, vector<1x1x64x4xbf16>
    %20 = vector.shape_cast %19 : vector<1x1x64x4xbf16> to vector<64x4xbf16>
    %c0_20 = arith.constant 0 : index
    %c0_21 = arith.constant 0 : index
    %21 = vector.load %arg6[%c0_20, %c0_21] : memref<4x8xbf16, #tpu.memory_space<vmem>>, vector<4x8xbf16>
    %cst_22 = arith.constant dense<0.000000e+00> : vector<64x8xf32>
    %22 = tpu.matmul %20, %21, %cst_22 {dimension_numbers = #tpu.dot_dimension_numbers<[1], [0], [0], [1], [0, 0, 1, 1], [], []>} : vector<64x4xbf16>, vector<4x8xbf16>, vector<64x8xf32> -> vector<64x8xf32>
    %c0_23 = arith.constant 0 : index
    %c0_24 = arith.constant 0 : index
    %23 = vector.load %arg7[%c0_23, %c0_24] : memref<1x8xf32, #tpu.memory_space<vmem>>, vector<1x8xf32>
    %24 = vector.broadcast %23 : vector<1x8xf32> to vector<64x8xf32>
    %25 = arith.addf %22, %24 : vector<64x8xf32>
    %cst_25 = arith.constant 0.000000e+00 : f32
    %26 = vector.broadcast %cst_25 : f32 to vector<64x8xf32>
    %27 = arith.maximumf %25, %26 : vector<64x8xf32>
    %28 = arith.addf %8, %27 : vector<64x8xf32>
    %c0_26 = arith.constant 0 : index
    %c2 = arith.constant 2 : index
    %c0_27 = arith.constant 0 : index
    %c0_28 = arith.constant 0 : index
    %29 = vector.load %arg3[%c0_26, %c2, %c0_27, %c0_28] : memref<1x4x64x4xbf16, #tpu.memory_space<vmem>>, vector<1x1x64x4xbf16>
    %30 = vector.shape_cast %29 : vector<1x1x64x4xbf16> to vector<64x4xbf16>
    %c0_29 = arith.constant 0 : index
    %c0_30 = arith.constant 0 : index
    %31 = vector.load %arg6[%c0_29, %c0_30] : memref<4x8xbf16, #tpu.memory_space<vmem>>, vector<4x8xbf16>
    %cst_31 = arith.constant dense<0.000000e+00> : vector<64x8xf32>
    %32 = tpu.matmul %30, %31, %cst_31 {dimension_numbers = #tpu.dot_dimension_numbers<[1], [0], [0], [1], [0, 0, 1, 1], [], []>} : vector<64x4xbf16>, vector<4x8xbf16>, vector<64x8xf32> -> vector<64x8xf32>
    %c0_32 = arith.constant 0 : index
    %c0_33 = arith.constant 0 : index
    %33 = vector.load %arg7[%c0_32, %c0_33] : memref<1x8xf32, #tpu.memory_space<vmem>>, vector<1x8xf32>
    %34 = vector.broadcast %33 : vector<1x8xf32> to vector<64x8xf32>
    %35 = arith.addf %32, %34 : vector<64x8xf32>
    %cst_34 = arith.constant 0.000000e+00 : f32
    %36 = vector.broadcast %cst_34 : f32 to vector<64x8xf32>
    %37 = arith.maximumf %35, %36 : vector<64x8xf32>
    %38 = arith.addf %8, %37 : vector<64x8xf32>
    %c0_35 = arith.constant 0 : index
    %c3 = arith.constant 3 : index
    %c0_36 = arith.constant 0 : index
    %c0_37 = arith.constant 0 : index
    %39 = vector.load %arg3[%c0_35, %c3, %c0_36, %c0_37] : memref<1x4x64x4xbf16, #tpu.memory_space<vmem>>, vector<1x1x64x4xbf16>
    %40 = vector.shape_cast %39 : vector<1x1x64x4xbf16> to vector<64x4xbf16>
    %c0_38 = arith.constant 0 : index
    %c0_39 = arith.constant 0 : index
    %41 = vector.load %arg6[%c0_38, %c0_39] : memref<4x8xbf16, #tpu.memory_space<vmem>>, vector<4x8xbf16>
    %cst_40 = arith.constant dense<0.000000e+00> : vector<64x8xf32>
    %42 = tpu.matmul %40, %41, %cst_40 {dimension_numbers = #tpu.dot_dimension_numbers<[1], [0], [0], [1], [0, 0, 1, 1], [], []>} : vector<64x4xbf16>, vector<4x8xbf16>, vector<64x8xf32> -> vector<64x8xf32>
    %c0_41 = arith.constant 0 : index
    %c0_42 = arith.constant 0 : index
    %43 = vector.load %arg7[%c0_41, %c0_42] : memref<1x8xf32, #tpu.memory_space<vmem>>, vector<1x8xf32>
    %44 = vector.broadcast %43 : vector<1x8xf32> to vector<64x8xf32>
    %45 = arith.addf %42, %44 : vector<64x8xf32>
    %cst_43 = arith.constant 0.000000e+00 : f32
    %46 = vector.broadcast %cst_43 : f32 to vector<64x8xf32>
    %47 = arith.maximumf %45, %46 : vector<64x8xf32>
    %48 = arith.addf %8, %47 : vector<64x8xf32>
    %49 = tpu.concatenate %18, %28, %38, %48 in 1 : vector<64x8xf32>, vector<64x8xf32>, vector<64x8xf32>, vector<64x8xf32> -> vector<64x32xf32>
    %c0_44 = arith.constant 0 : index
    %c0_45 = arith.constant 0 : index
    %c0_46 = arith.constant 0 : index
    %50 = vector.load %arg8[%c0_44, %c0_45, %c0_46] : memref<1x64x32xf32, #tpu.memory_space<vmem>>, vector<1x64x32xf32>
    %51 = vector.shape_cast %50 : vector<1x64x32xf32> to vector<64x32xf32>
    %52 = vector.shape_cast %49 : vector<64x32xf32> to vector<1x64x32xf32>
    tpu.vector_store %arg8[%c0_44, %c0_45, %c0_46], %52 {strides = array<i32>} : memref<1x64x32xf32, #tpu.memory_space<vmem>>, vector<1x64x32xf32>,
    return
  }
  func.func @transform_0(%arg0: i32, %arg1: i32) -> (i32, i32, i32) {
    %c0_i32 = arith.constant 0 : i32
    %c0_i32_0 = arith.constant 0 : i32
    return %arg0, %arg1, %c0_i32 : i32, i32, i32
  }
  func.func @transform_1(%arg0: i32, %arg1: i32) -> (i32, i32, i32, i32) {
    %c0_i32 = arith.constant 0 : i32
    %c0_i32_0 = arith.constant 0 : i32
    %c0_i32_1 = arith.constant 0 : i32
    return %arg0, %c0_i32, %arg1, %c0_i32_0 : i32, i32, i32, i32
  }
  func.func @transform_2(%arg0: i32, %arg1: i32) -> (i32, i32) {
    %c0_i32 = arith.constant 0 : i32
    %c0_i32_0 = arith.constant 0 : i32
    %c0_i32_1 = arith.constant 0 : i32
    return %c0_i32, %c0_i32_0 : i32, i32
  }
  func.func @transform_3(%arg0: i32, %arg1: i32) -> (i32, i32) {
    %c0_i32 = arith.constant 0 : i32
    %c0_i32_0 = arith.constant 0 : i32
    %c0_i32_1 = arith.constant 0 : i32
    return %c0_i32, %c0_i32_0 : i32, i32
  }
  func.func @transform_4(%arg0: i32, %arg1: i32) -> (i32, i32) {
    %c0_i32 = arith.constant 0 : i32
    %c0_i32_0 = arith.constant 0 : i32
    %c0_i32_1 = arith.constant 0 : i32
    return %c0_i32, %c0_i32_0 : i32, i32
  }
  func.func @transform_5(%arg0: i32, %arg1: i32) -> (i32, i32) {
    %c0_i32 = arith.constant 0 : i32
    %c0_i32_0 = arith.constant 0 : i32
    %c0_i32_1 = arith.constant 0 : i32
    return %c0_i32, %c0_i32_0 : i32, i32
  }
  func.func @transform_6(%arg0: i32, %arg1: i32) -> (i32, i32, i32) {
    %c0_i32 = arith.constant 0 : i32
    %c0_i32_0 = arith.constant 0 : i32
    return %arg0, %arg1, %c0_i32 : i32, i32, i32
  }
}

</mosaic_0001>

<bundles_post_ra>
// kernel: tpu_custom_call.1
= control target key start
LH: loop header
LB: loop body
LE: loop exit
PB: predicated region body
PF: predicated region fallthrough
CT: control target
= control target key end

     0   :  { %s1492_s21 = smov 0   ;;  %s1494_s22 = smov 0   ;;  %s1760_s0 = inlined_call_operand.vmem [shape: bf16[2,64,36], index: 0, kind: input, shape index: {}]   ;;  %s1761_s1 = inlined_call_operand.vmem [shape: bf16[2,4,64,4], index: 1, kind: input, shape index: {}]   ;;  %s1762_s2 = inlined_call_operand.vmem [shape: bf16[36,8], index: 2, kind: input, shape index: {}]   ;;  %s1763_s3 = inlined_call_operand.vmem [shape: f32[1,8], index: 3, kind: input, shape index: {}]   ;;  %s1764_s4 = inlined_call_operand.vmem [shape: bf16[4,8], index: 4, kind: input, shape index: {}]   ;;  %s1765_s5 = inlined_call_operand.vmem [shape: f32[1,8], index: 5, kind: input, shape index: {}]   ;;  %s1766_s6 = inlined_call_operand.vmem [shape: f32[2,64,32], index: 6, kind: output, shape index: {}]  }
   0x1   :  { %s1496_s23 = smov 0  }
   0x2 LB: > { %s28_s24 = sadd.s32 1, %s1448_s22  ;;  %p1213_p0 = scmp.ge.s32.totalorder %s1452_s23, 1  ;;  %s1452_s23 = sphi %s1496_s23, %s16_s23   ;;  %s1448_s22 = sphi %s1494_s22, %s1768_s22   ;;  %s1444_s21 = sphi %s1492_s21, %s1767_s21  }
   0x3   : > { %p30_p1 = scmp.ge.s32.totalorder %s28_s24, 2  ;;  %p250_p2 = scmp.lt.s32.totalorder %s1452_s23, 3 }
   0x5   : > { %s1770_s24 = smov (%p30_p1, %s28_s24), 0  ;;  %p251_p3 = pnand %p1213_p0, %p250_p2 }
   0x6   : > { %p298_p4 = scmp.lt.s32.totalorder (!%p251_p3), %s1444_s21, 1  ;;  %s1454_s25 = smov (!%p251_p3), 8  }
   0x7   : > { %254 = sbr.rel (%p251_p3) target bundleno = 398 (0x18e), region = 44  ;;  %s1455_s26 = smov (!%p251_p3), 16  }
   0x8   : > { %s1456_s27 = smov (!%p251_p3), 24  }
   0xc   : > { %v1407_v0 = vld [vmem:[%s1762_s2 + $0x10] ss:$0 sps:$4 sm:$0x33]   ;;  %vm396_vm0 = vcmask 1041408   ;;  %v481_v1 = vld [vmem:[%s1764_s4] sm:$0x3] }
   0xd   : > { %1375 = vmatprep.subr.msk.bf16.mxu0 %vm396_vm0, %v1407_v0  ;;  %v398_v2 = vsel %vm396_vm0, %v1407_v0, 0  ;;  %1376 = vmatprep.subr.msk.bf16.mxu1 %vm396_vm0, %v481_v1  ;;  %v523_v3 = vsel %vm396_vm0, %v481_v1, 0  ;;  %v1408_v4 = vld [vmem:[%s1762_s2 + $0x8] sm:$0xff]   ;;  %s1772_s21 = smov (!%p298_p4, %s1444_s21), 1  ;;  %v1411_v5 = vld [vmem:[%s1762_s2] sm:$0xff]   ;;  %vm509_vm1 = vcmask 31744  }
   0xe   : > { %1322 = vmatpush3.bf16.msra.mxu0 %v398_v2  ;;  %1336 = vmatpush3.bf16.msra.mxu1 %v523_v3  ;;  %s1292_s9 = sshll.u32 %s1772_s21, 7  ;;  %s1291_s10 = sshll.u32 %s1772_s21, 5  ;;  %vm383_vm2 = vcmask 293888   ;;  %v1580_v26 = vld [vmem:[%s1765_s5] ss:$0 sm:$0xff]  ;;  %vm1068_vm3 = vcmask 64512  }
   0xf   : > { %1323 = vmatprep.subr.bf16.mxu0 %v1408_v4  ;;  %1377 = vmatprep.subr.msk.bf16.mxu1 %vm396_vm0, %v481_v1  ;;  %s1534_s13 = scalar_lea.vmem %s1761_s1, %s1292_s9  ;;  %s305_s16 = scalar_lea.vmem %s1760_s0, %s1291_s10  ;;  %v1220_v29 = vld [vmem:[%s1763_s3] ss:$0 sm:$0xff]  ;;  %vm1086_vm4 = vcmask 195584   ;;  %vm1077_vm5 = vcmask 130048   ;;  %vm1095_vm6 = vcmask 261120  }
  0x10   : > { %v1409_v6 = vld [vmem:[%s1534_s13] sm:$0xff]   ;;  %v1410_v7 = vld [vmem:[%s1534_s13 + $0x8] sm:$0xff]   ;;  %v1414_v10 = vld [vmem:[%s1534_s13 + $0x10] sm:$0xff]   ;;  %s1293_s28 = sshll.u32 %s1772_s21, 6 }
  0x11   : > { %1337 = vmatprep.mubr.msk.bf16.mxu1 %vm509_vm1, %v1409_v6  ;;  %v1412_v8 = vld [vmem:[%s305_s16] sm:$0xff]   ;;  %v1413_v9 = vld [vmem:[%s305_s16 + $0x8] sm:$0xff]   ;;  %v1416_v11 = vld [vmem:[%s305_s16 + $0x10] sm:$0xff]   ;;  %s1703_s7 = scalar_lea.vmem %s1766_s6, %s1293_s28 }
  0x12   : > { %1324 = vmatpush3.bf16.msra.mxu0 %v1408_v4  ;;  %1338 = vmatmul.mubr.msk.bf16.vlgmr.msra.gmra.mxu1 %vm509_vm1, %v1410_v7  ;;  %v1415_v12 = vld [vmem:[%s1534_s13 + $0x18] sm:$0xff]   ;;  %v1418_v13 = vld [vmem:[%s1534_s13 + $0x20] sm:$0xff]   ;;  %v1419_v16 = vld [vmem:[%s1534_s13 + $0x28] sm:$0xff]  }
  0x13   : > { %1325 = vmatprep.subr.bf16.mxu0 %v1411_v5  ;;  %1346 = vmatpush3.bf16.msra.mxu1 %v523_v3  ;;  %v1417_v14 = vld [vmem:[%s305_s16 + $0x18] sm:$0xff]   ;;  %v1420_v15 = vld [vmem:[%s1534_s13 + $0x40] sm:$0xff]   ;;  %v1422_v17 = vld [vmem:[%s1534_s13 + $0x30] sm:$0xff]  }
  0x14   : > { %1327 = vmatprep.mubr.msk.bf16.mxu0 %vm383_vm2, %v1412_v8  ;;  %1379 = vmatprep.subr.msk.bf16.mxu1 %vm396_vm0, %v481_v1  ;;  %v1421_v18 = vld [vmem:[%s1534_s13 + $0x48] sm:$0xff]   ;;  %v1424_v19 = vld [vmem:[%s1534_s13 + $0x50] sm:$0xff]   ;;  %v1423_v20 = vld [vmem:[%s1534_s13 + $0x38] sm:$0xff]  }
  0x15   : > { %1341 = vmatprep.mubr.msk.bf16.mxu1 %vm509_vm1, %v1414_v10  ;;  %v1426_v21 = vld [vmem:[%s1534_s13 + $0x60] sm:$0xff]   ;;  %v1425_v22 = vld [vmem:[%s1534_s13 + $0x58] sm:$0xff]   ;;  %v1427_v23 = vld [vmem:[%s1534_s13 + $0x68] sm:$0xff]  }
  0x16   : > { %1326 = vmatpush3.bf16.msra.mxu0 %v1411_v5  ;;  %v1428_v24 = vld [vmem:[%s1534_s13 + $0x70] sm:$0xff]   ;;  %v1429_v25 = vld [vmem:[%s1534_s13 + $0x78] sm:$0xff]  }
  0x17   : > { %1378 = vmatprep.subr.msk.bf16.mxu0 %vm396_vm0, %v481_v1 }
  0x19   : > { %1328 = vmatmul.mubr.msk.bf16.vlgmr.msra.gmra.mxu0 %vm383_vm2, %v1413_v9 }
  0x1a   : > { %1356 = vmatpush3.bf16.msra.mxu0 %v523_v3  ;;  %1331 = vmatprep.mubr.msk.bf16.mxu0 %vm383_vm2, %v1416_v11 }
  0x1b   : > { %1342 = vmatmul.mubr.msk.bf16.gmra.mxu1 %vm509_vm1, %v1415_v12 }
  0x1c   : > { %1347 = vmatprep.mubr.msk.bf16.mxu1 %vm509_vm1, %v1418_v13 }
  0x21   : > { %1332 = vmatmul.mubr.msk.bf16.gmra.mxu0 %vm383_vm2, %v1417_v14 }
  0x22   : > { %1357 = vmatprep.mubr.msk.bf16.mxu0 %vm509_vm1, %v1420_v15 }
  0x23   : > { %1348 = vmatmul.mubr.msk.bf16.vlgmr.msra.gmra.mxu1 %vm509_vm1, %v1419_v16 }
  0x24   : > { %1351 = vmatprep.mubr.msk.bf16.mxu1 %vm509_vm1, %v1422_v17  ;;  %1366 = vmatpush3.bf16.msra.mxu1 %v523_v3 }
  0x29   : > { %1358 = vmatmul.mubr.msk.bf16.vlgmr.msra.gmra.mxu0 %vm509_vm1, %v1421_v18 }
  0x2a   : > { %1361 = vmatprep.mubr.msk.bf16.mxu0 %vm509_vm1, %v1424_v19 }
  0x2b   : > { %1352 = vmatmul.mubr.msk.bf16.gmra.mxu1 %vm509_vm1, %v1423_v20 }
  0x2c   : > { %1367 = vmatprep.mubr.msk.bf16.mxu1 %vm509_vm1, %v1426_v21 }
  0x31   : > { %1362 = vmatmul.mubr.msk.bf16.gmra.mxu0 %vm509_vm1, %v1425_v22 }
  0x33   : > { %1368 = vmatmul.mubr.msk.bf16.vlgmr.msra.gmra.mxu1 %vm509_vm1, %v1427_v23 }
  0x34   : > { %1371 = vmatprep.mubr.msk.bf16.mxu1 %vm509_vm1, %v1428_v24 }
  0x3b   : > { %1372 = vmatmul.mubr.msk.bf16.gmra.mxu1 %vm509_vm1, %v1429_v25 }
  0xd2   : > { %v1339_v27 = vpop.f32.mrf.mxu1 }
  0xd3   : > { %v568_v28 = vadd.f32 %v1339_v27, %v1580_v26 }
  0xd4   : > { %v559_v30 = vpop.f32.mrf.mxu1 }
  0xd5   : > { %v560_v31 = vadd.f32 %v1580_v26, %v559_v30  ;;  %v592_v37 = vmax.f32 %v568_v28, 0.0 }
  0xd6   : > { %v1340_v33 = vpop.f32.mrf.mxu1 }
  0xd7   : > { %v571_v35 = vadd.f32 %v1340_v33, %v1580_v26  ;;  %v590_v43 = vmax.f32 %v560_v31, 0.0 }
  0xd8   : > { %v562_v39 = vpop.f32.mrf.mxu1 }
  0xd9   : > { %v1329_v32 = vpop.f32.mrf.mxu0  ;;  %v563_v41 = vadd.f32 %v1580_v26, %v562_v39  ;;  %v593_v50 = vmax.f32 %v571_v35, 0.0 }
  0xda   : > { %v443_v34 = vadd.f32 %v1329_v32, %v1220_v29 }
  0xdb   : > { %v434_v36 = vpop.f32.mrf.mxu0  ;;  %v1343_v45 = vpop.f32.mrf.mxu1  ;;  %v591_v57 = vmax.f32 %v563_v41, 0.0 }
  0xdc   : > { %v1588_v38 = vmax.f32 %v443_v34, 0.0  ;;  %v435_v40 = vadd.f32 %v1220_v29, %v434_v36  ;;  %v584_v48 = vadd.f32 %v1343_v45, %v1580_v26 }
  0xdd   : > { %v1330_v42 = vpop.f32.mrf.mxu0  ;;  %v575_v52 = vpop.f32.mrf.mxu1 }
  0xde   : > { %v1591_v44 = vmax.f32 %v435_v40, 0.0  ;;  %v446_v46 = vadd.f32 %v1330_v42, %v1220_v29  ;;  %v1594_v47 = vadd.f32 %v592_v37, %v1588_v38  ;;  %v576_v55 = vadd.f32 %v1580_v26, %v575_v52 }
  0xdf   : > { %v437_v49 = vpop.f32.mrf.mxu0  ;;  %v1344_v59 = vpop.f32.mrf.mxu1  ;;  %v596_v0 = vmax.f32 %v584_v48, 0.0 }
  0xe0   : > { %v1597_v51 = vmax.f32 %v446_v46, 0.0  ;;  %v438_v53 = vadd.f32 %v1220_v29, %v437_v49  ;;  %v1600_v54 = vadd.f32 %v590_v43, %v1591_v44  ;;  %v587_v62 = vadd.f32 %v1344_v59, %v1580_v26 }
  0xe1   : > { %v1333_v56 = vpop.f32.mrf.mxu0  ;;  %v578_v2 = vpop.f32.mrf.mxu1  ;;  %v594_v7 = vmax.f32 %v576_v55, 0.0 }
  0xe2   : > { %v1603_v58 = vmax.f32 %v438_v53, 0.0  ;;  %v459_v60 = vadd.f32 %v1333_v56, %v1220_v29  ;;  %v1606_v61 = vadd.f32 %v593_v50, %v1597_v51  ;;  %v579_v5 = vadd.f32 %v1580_v26, %v578_v2 }
  0xe3   : > { %v450_v63 = vpop.f32.mrf.mxu0  ;;  %v1349_v9 = vpop.f32.mrf.mxu1  ;;  %v597_v14 = vmax.f32 %v587_v62, 0.0 }
  0xe4   : > { %v1609_v1 = vmax.f32 %v459_v60, 0.0  ;;  %v451_v3 = vadd.f32 %v1220_v29, %v450_v63  ;;  %v1612_v4 = vadd.f32 %v591_v57, %v1603_v58  ;;  %v690_v12 = vadd.f32 %v1349_v9, %v1580_v26 }
  0xe5   : > { %v1334_v6 = vpop.f32.mrf.mxu0  ;;  %v681_v16 = vpop.f32.mrf.mxu1  ;;  %v595_v22 = vmax.f32 %v579_v5, 0.0 }
  0xe6   : > { %v1615_v8 = vmax.f32 %v451_v3, 0.0  ;;  %v462_v10 = vadd.f32 %v1334_v6, %v1220_v29  ;;  %v1618_v11 = vadd.f32 %v596_v0, %v1609_v1  ;;  %v714_v19 = vmax.f32 %v690_v12, 0.0 }
  0xe7   : > { %v453_v13 = vpop.f32.mrf.mxu0  ;;  %v682_v20 = vadd.f32 %v1580_v26, %v681_v16  ;;  %v1350_v24 = vpop.f32.mrf.mxu1 }
  0xe8   : > { %v1621_v15 = vmax.f32 %v462_v10, 0.0  ;;  %v454_v17 = vadd.f32 %v1220_v29, %v453_v13  ;;  %v1624_v18 = vadd.f32 %v594_v7, %v1615_v8  ;;  %v693_v30 = vadd.f32 %v1350_v24, %v1580_v26 }
  0xe9   : > { %v1359_v21 = vpop.f32.mrf.mxu0  ;;  %v712_v28 = vmax.f32 %v682_v20, 0.0  ;;  %v722_v29 = vadd.f32 %v714_v19, %v1588_v38  ;;  %v684_v33 = vpop.f32.mrf.mxu1 }
  0xea   : > { %v1627_v23 = vmax.f32 %v454_v17, 0.0  ;;  %v812_v25 = vadd.f32 %v1359_v21, %v1580_v26  ;;  %v1631_v27 = vadd.f32 %v597_v14, %v1621_v15  ;;  %v715_v35 = vmax.f32 %v693_v30, 0.0 }
  0xeb   : > { %v803_v31 = vpop.f32.mrf.mxu0  ;;  %v685_v36 = vadd.f32 %v1580_v26, %v684_v33  ;;  %984 = vrot.lane.b32.xlu1 %v722_v29, %s1454_s25  ;;  %v720_v39 = vadd.f32 %v712_v28, %v1591_v44  ;;  %v1353_v40 = vpop.f32.mrf.mxu1 }
  0xec   : > { %v836_v32 = vmax.f32 %v812_v25, 0.0  ;;  %v1636_v34 = vadd.f32 %v595_v22, %v1627_v23  ;;  %v723_v42 = vadd.f32 %v715_v35, %v1597_v51  ;;  %v804_v52 = vadd.f32 %v1580_v26, %v803_v31 }
  0xed   : > { %v1360_v37 = vpop.f32.mrf.mxu0  ;;  %980 = vrot.lane.b32.xlu0 %v720_v39, %s1454_s25  ;;  %v697_v48 = vpop.f32.mrf.mxu1  ;;  %v713_v50 = vmax.f32 %v685_v36, 0.0  ;;  %v706_v2 = vadd.f32 %v1353_v40, %v1580_v26 }
  0xee   : > { %v815_v41 = vadd.f32 %v1360_v37, %v1580_v26  ;;  %v844_v43 = vadd.f32 %v836_v32, %v1588_v38  ;;  %v834_v0 = vmax.f32 %v804_v52, 0.0  ;;  %v698_v14 = vadd.f32 %v1580_v26, %v697_v48 }
  0xef   : > { %v806_v45 = vpop.f32.mrf.mxu0  ;;  %986 = vrot.lane.b32.xlu1 %v723_v42, %s1454_s25  ;;  %v1354_v56 = vpop.f32.mrf.mxu1  ;;  %v721_v63 = vadd.f32 %v713_v50, %v1603_v58  ;;  %v718_v13 = vmax.f32 %v706_v2, 0.0 }
  0xf0   : > { %v837_v46 = vmax.f32 %v815_v41, 0.0  ;;  %v807_v49 = vadd.f32 %v1580_v26, %v806_v45  ;;  %v709_v59 = vadd.f32 %v1354_v56, %v1580_v26  ;;  %v842_v12 = vadd.f32 %v834_v0, %v1591_v44 }
  0xf1   : > { %v1363_v53 = vpop.f32.mrf.mxu0  ;;  %1016 = vrot.lane.b32.xlu0 %v844_v43, %s1455_s26  ;;  %v700_v60 = vpop.f32.mrf.mxu1  ;;  %v726_v24 = vadd.f32 %v718_v13, %v1609_v1  ;;  %v716_v25 = vmax.f32 %v698_v14, 0.0 }
  0xf2   : > { %v845_v55 = vadd.f32 %v837_v46, %v1597_v51  ;;  %v835_v57 = vmax.f32 %v807_v49, 0.0  ;;  %v719_v6 = vmax.f32 %v709_v59, 0.0  ;;  %v701_v7 = vadd.f32 %v1580_v26, %v700_v60 }
  0xf3   : > { %v819_v62 = vpop.f32.mrf.mxu0  ;;  %v1369_v3 = vpop.f32.mrf.mxu1  ;;  %v828_v28 = vadd.f32 %v1363_v53, %v1580_v26  ;;  %v724_v35 = vadd.f32 %v716_v25, %v1615_v8 }
  0xf4   : > { %1018 = vrot.lane.b32.xlu1 %v845_v55, %s1455_s26  ;;  %v843_v5 = vadd.f32 %v835_v57, %v1603_v58  ;;  %v727_v17 = vadd.f32 %v719_v6, %v1621_v15  ;;  %v717_v19 = vmax.f32 %v701_v7, 0.0  ;;  %v820_v37 = vadd.f32 %v1580_v26, %v819_v62 }
  0xf5   : > { %982 = vrot.lane.b32.xlu0 %v721_v63, %s1454_s25  ;;  %v1364_v9 = vpop.f32.mrf.mxu0  ;;  %v925_v10 = vpop.f32.mrf.mxu1  ;;  %v840_v36 = vmax.f32 %v828_v28, 0.0  ;;  %v934_v46 = vadd.f32 %v1369_v3, %v1580_v26 }
  0xf6   : > { %v831_v20 = vadd.f32 %v1364_v9, %v1580_v26  ;;  %v725_v29 = vadd.f32 %v717_v19, %v1627_v23  ;;  %v838_v45 = vmax.f32 %v820_v37, 0.0  ;;  %v926_v56 = vadd.f32 %v1580_v26, %v925_v10 }
  0xf7   : > { %v1370_v16 = vpop.f32.mrf.mxu1  ;;  %v822_v21 = vpop.f32.mrf.mxu0  ;;  %v848_v43 = vadd.f32 %v840_v36, %v1609_v1  ;;  %v958_v55 = vmax.f32 %v934_v46, 0.0 }
  0xf8   : > { %1014 = vrot.lane.b32.xlu1 %v843_v5, %s1455_s26  ;;  %v841_v31 = vmax.f32 %v831_v20, 0.0  ;;  %v823_v32 = vadd.f32 %v1580_v26, %v822_v21  ;;  %v937_v41 = vadd.f32 %v1370_v16, %v1580_v26  ;;  %v846_v53 = vadd.f32 %v838_v45, %v1615_v8 }
  0xf9   : > { %1012 = vrot.lane.b32.xlu0 %v842_v12, %s1455_s26  ;;  %v928_v22 = vpop.f32.mrf.mxu1  ;;  %v966_v62 = vadd.f32 %v958_v55, %v1588_v38  ;;  %v956_v63 = vmax.f32 %v926_v56, 0.0 }
  0xfa   : > { %v849_v39 = vadd.f32 %v841_v31, %v1621_v15  ;;  %v839_v40 = vmax.f32 %v823_v32, 0.0  ;;  %v959_v49 = vmax.f32 %v937_v41, 0.0  ;;  %v929_v50 = vadd.f32 %v1580_v26, %v928_v22 }
  0xfb   : > { %v1373_v30 = vpop.f32.mrf.mxu1 }
  0xfc   : > { %994 = vrot.lane.b32.xlu1 %v727_v17, %s1454_s25  ;;  %v847_v48 = vadd.f32 %v839_v40, %v1627_v23  ;;  %v967_v57 = vadd.f32 %v959_v49, %v1597_v51  ;;  %v957_v59 = vmax.f32 %v929_v50, 0.0  ;;  %v964_v51 = vadd.f32 %v956_v63, %v1591_v44 }
  0xfd   : > { %992 = vrot.lane.b32.xlu0 %v726_v24, %s1454_s25  ;;  %v941_v33 = vpop.f32.mrf.mxu1  ;;  %v950_v6 = vadd.f32 %v1373_v30, %v1580_v26 }
  0xfe   : > { %v942_v0 = vadd.f32 %v1580_v26, %v941_v33  ;;  %v965_v2 = vadd.f32 %v957_v59, %v1603_v58 }
  0xff   : > { %v1374_v42 = vpop.f32.mrf.mxu1  ;;  %v962_v10 = vmax.f32 %v950_v6, 0.0 }
 0x100   : > { %990 = vrot.lane.b32.xlu1 %v725_v29, %s1454_s25  ;;  %v953_v3 = vadd.f32 %v1374_v42, %v1580_v26  ;;  %v960_v7 = vmax.f32 %v942_v0, 0.0 }
 0x101   : > { %988 = vrot.lane.b32.xlu0 %v724_v35, %s1454_s25  ;;  %v944_v52 = vpop.f32.mrf.mxu1  ;;  %v970_v13 = vadd.f32 %v962_v10, %v1609_v1 }
 0x102   : > { %v945_v60 = vadd.f32 %v1580_v26, %v944_v52  ;;  %v963_v9 = vmax.f32 %v953_v3, 0.0  ;;  %v968_v12 = vadd.f32 %v960_v7, %v1615_v8 }
 0x104   : > { %1026 = vrot.lane.b32.xlu1 %v849_v39, %s1455_s26  ;;  %v961_v5 = vmax.f32 %v945_v60, 0.0  ;;  %v971_v58 = vadd.f32 %v963_v9, %v1621_v15 }
 0x105   : > { %1024 = vrot.lane.b32.xlu0 %v848_v43, %s1455_s26 }
 0x106   : > { %v969_v38 = vadd.f32 %v961_v5, %v1627_v23 }
 0x108   : > { %1022 = vrot.lane.b32.xlu1 %v847_v48, %s1455_s26 }
 0x109   : > { %1020 = vrot.lane.b32.xlu0 %v846_v53, %s1455_s26 }
 0x10c   : > { %1050 = vrot.lane.b32.xlu1 %v967_v57, %s1456_s27 }
 0x10d   : > { %1048 = vrot.lane.b32.xlu0 %v966_v62, %s1456_s27 }
 0x110   : > { %1046 = vrot.lane.b32.xlu1 %v965_v2, %s1456_s27 }
 0x111   : > { %1044 = vrot.lane.b32.xlu0 %v964_v51, %s1456_s27 }
 0x114   : > { %1054 = vrot.lane.b32.xlu1 %v969_v38, %s1456_s27 }
 0x115   : > { %1052 = vrot.lane.b32.xlu0 %v968_v12, %s1456_s27 }
 0x118   : > { %1058 = vrot.lane.b32.xlu1 %v971_v58, %s1456_s27 }
 0x119   : > { %1056 = vrot.lane.b32.xlu0 %v970_v13, %s1456_s27 }
 0x15d   : > { %v985_v44 = vpop.permute.xlu1 %984 }
 0x15e   : > { %v1071_v32 = vsel %vm1068_vm3, %v1594_v47, %v985_v44 }
 0x15f   : > { %v981_v26 = vpop.permute.xlu0 %980 }
 0x160   : > { %v1069_v47 = vsel %vm1068_vm3, %v1600_v54, %v981_v26 }
 0x161   : > { %v987_v14 = vpop.permute.xlu1 %986 }
 0x162   : > { %v1072_v30 = vsel %vm1068_vm3, %v1606_v61, %v987_v14 }
 0x163   : > { %v1017_v16 = vpop.permute.xlu0 %1016 }
 0x164   : > { %v1080_v61 = vsel %vm1077_vm5, %v1071_v32, %v1017_v16 }
 0x166   : > { %v1019_v17 = vpop.permute.xlu1 %1018 }
 0x167   : > { %v983_v19 = vpop.permute.xlu0 %982  ;;  %v1081_v29 = vsel %vm1077_vm5, %v1072_v30, %v1019_v17 }
 0x168   : > { %v1070_v36 = vsel %vm1068_vm3, %v1612_v4, %v983_v19 }
 0x16a   : > { %v1015_v23 = vpop.permute.xlu1 %1014 }
 0x16b   : > { %v1013_v20 = vpop.permute.xlu0 %1012  ;;  %v1079_v39 = vsel %vm1077_vm5, %v1070_v36, %v1015_v23 }
 0x16c   : > { %v1078_v42 = vsel %vm1077_vm5, %v1069_v47, %v1013_v20 }
 0x16e   : > { %v995_v21 = vpop.permute.xlu1 %994 }
 0x16f   : > { %v993_v22 = vpop.permute.xlu0 %992 }
 0x172   : > { %v991_v8 = vpop.permute.xlu1 %990 }
 0x173   : > { %v989_v24 = vpop.permute.xlu0 %988  ;;  %v1074_v4 = vsel %vm1068_vm3, %v1636_v34, %v991_v8  ;;  %v1076_v34 = vsel %vm1068_vm3, %v1631_v27, %v995_v21 }
 0x174   : > { %v1073_v54 = vsel %vm1068_vm3, %v1624_v18, %v989_v24  ;;  %v1075_v18 = vsel %vm1068_vm3, %v1618_v11, %v993_v22 }
 0x176   : > { %v1027_v25 = vpop.permute.xlu1 %1026 }
 0x177   : > { %v1025_v15 = vpop.permute.xlu0 %1024  ;;  %v1085_v55 = vsel %vm1077_vm5, %v1076_v34, %v1027_v25 }
 0x178   : > { %v1084_v59 = vsel %vm1077_vm5, %v1075_v18, %v1025_v15 }
 0x17a   : > { %v1023_v28 = vpop.permute.xlu1 %1022 }
 0x17b   : > { %v1021_v1 = vpop.permute.xlu0 %1020  ;;  %v1083_v46 = vsel %vm1077_vm5, %v1074_v4, %v1023_v28 }
 0x17c   : > { %v1082_v50 = vsel %vm1077_vm5, %v1073_v54, %v1021_v1 }
 0x17e   : > { %v1051_v31 = vpop.permute.xlu1 %1050 }
 0x17f   : > { %v1090_v33 = vsel %vm1086_vm4, %v1081_v29, %v1051_v31  ;;  %v1049_v35 = vpop.permute.xlu0 %1048 }
 0x180   : > { %1099 = vst.msk [vmem:[%s1703_s7 + $0x18] sm:$0xff] %vm1095_vm6, %v1090_v33  ;;  %v1089_v37 = vsel %vm1086_vm4, %v1080_v61, %v1049_v35 }
 0x181   : > { %1098 = vst.msk [vmem:[%s1703_s7 + $0x10] sm:$0xff] %vm1095_vm6, %v1089_v37 }
 0x182   : > { %v1047_v40 = vpop.permute.xlu1 %1046 }
 0x183   : > { %v1088_v41 = vsel %vm1086_vm4, %v1079_v39, %v1047_v40  ;;  %v1045_v43 = vpop.permute.xlu0 %1044 }
 0x184   : > { %1097 = vst.msk [vmem:[%s1703_s7 + $0x8] sm:$0xff] %vm1095_vm6, %v1088_v41  ;;  %v1087_v45 = vsel %vm1086_vm4, %v1078_v42, %v1045_v43 }
 0x185   : > { %1096 = vst.msk [vmem:[%s1703_s7] sm:$0xff] %vm1095_vm6, %v1087_v45 }
 0x186   : > { %v1055_v48 = vpop.permute.xlu1 %1054 }
 0x187   : > { %v1092_v49 = vsel %vm1086_vm4, %v1083_v46, %v1055_v48  ;;  %v1053_v52 = vpop.permute.xlu0 %1052 }
 0x188   : > { %1101 = vst.msk [vmem:[%s1703_s7 + $0x28] sm:$0xff] %vm1095_vm6, %v1092_v49  ;;  %v1091_v53 = vsel %vm1086_vm4, %v1082_v50, %v1053_v52 }
 0x189   : > { %1100 = vst.msk [vmem:[%s1703_s7 + $0x20] sm:$0xff] %vm1095_vm6, %v1091_v53 }
 0x18a   : > { %v1059_v56 = vpop.permute.xlu1 %1058 }
 0x18b   : > { %v1094_v57 = vsel %vm1086_vm4, %v1085_v55, %v1059_v56  ;;  %v1057_v60 = vpop.permute.xlu0 %1056 }
 0x18c   : > { %1103 = vst.msk [vmem:[%s1703_s7 + $0x38] sm:$0xff] %vm1095_vm6, %v1094_v57  ;;  %v1093_v62 = vsel %vm1086_vm4, %v1084_v59, %v1057_v60 }
 0x18d   : > { %1102 = vst.msk [vmem:[%s1703_s7 + $0x30] sm:$0xff] %vm1095_vm6, %v1093_v62 }
 0x18e PF: > { %s16_s23 = sadd.s32 1, %s1452_s23   ;;  %s1767_s21 = smov %s1448_s22 }
 0x18f   : > { %p13_p5 = scmp.ge.s32.totalorder %s16_s23, 4   ;;  %s1768_s22 = smov %s1770_s24 }
 0x191   :  { %15 = sbr.rel (!%p13_p5) target bundleno = 2 (0x2), region = 80 }

</bundles_post_ra>
